<compile_context>
chip_gen: v7x
topology: tpu7x:2x2x1
jax: 0.10.0
libtpu: 0.0.40
codegen_flags: <defaults>
</compile_context>

<pallas_src>
import jax
import jax.numpy as jnp
from jax.experimental import pallas as pl
from jax.experimental.pallas import tpu as pltpu

_LANE = 128


def _net_kernel(x_ref, w1_ref, b1_ref, w2_ref, b2_ref, out_ref):
    x = x_ref[...]        # (B, S)  f32
    w1 = w1_ref[...]      # (S, H)  f32

    # fc1 on the VPU: state_dim is tiny, so an unrolled multiply-accumulate
    # over one (B, H) slab beats pushing a K=4 operand through the MXU.
    S = x.shape[1]
    h = x[:, 0:1] * w1[0:1, :]
    for s in range(1, S):
        h = h + x[:, s:s + 1] * w1[s:s + 1, :]
    h = h + b1_ref[...]           # (1, H) broadcast over batch
    h = jnp.maximum(h, 0.0)       # ReLU

    # fc2 on the MXU into a lane-dense (B, A_pad) slab; bias add on the VPU.
    o = jnp.dot(h, w2_ref[...], preferred_element_type=jnp.float32)
    o = o + b2_ref[...]           # (1, A_pad) broadcast over batch
    out_ref[...] = o.astype(out_ref.dtype)


def net_forward(x, w1, b1, w2, b2):
    """x: (B, state_dim) f32. Returns (B, action_dim) f32 Q-values."""
    B, S = x.shape
    H = w1.shape[1]
    A = w2.shape[1]

    # Lane-dense output: pad fc2's output dim up to a multiple of 128 so the
    # kernel's store is full-lane (no masked partial stores); slice afterwards.
    A_pad = max(_LANE, ((A + _LANE - 1) // _LANE) * _LANE)
    w2_p = jnp.zeros((H, A_pad), w2.dtype).at[:, :A].set(w2)
    b2_p = jnp.zeros((1, A_pad), b2.dtype).at[0, :A].set(b2)
    b1_2d = b1.reshape(1, H)

    vmem = pltpu.MemorySpace.VMEM
    out_padded = pl.pallas_call(
        _net_kernel,
        out_shape=jax.ShapeDtypeStruct((B, A_pad), jnp.float32),
        in_specs=[
            pl.BlockSpec(memory_space=vmem),   # x
            pl.BlockSpec(memory_space=vmem),   # w1
            pl.BlockSpec(memory_space=vmem),   # b1 (1, H)
            pl.BlockSpec(memory_space=vmem),   # w2 padded (H, A_pad)
            pl.BlockSpec(memory_space=vmem),   # b2 padded (1, A_pad)
        ],
        out_specs=pl.BlockSpec(memory_space=vmem),
    )(x, w1, b1_2d, w2_p, b2_p)

    return out_padded[:, :A]


def init_params(key, state_dim, hidden_dim, action_dim):
    """Deterministic init mimicking torch.nn.Linear's U(-1/sqrt(fan_in), 1/sqrt(fan_in))."""
    k1, k2, k3, k4 = jax.random.split(key, 4)
    bound1 = 1.0 / jnp.sqrt(state_dim)
    bound2 = 1.0 / jnp.sqrt(hidden_dim)
    w1 = jax.random.uniform(k1, (state_dim, hidden_dim), jnp.float32, -bound1, bound1)
    b1 = jax.random.uniform(k2, (hidden_dim,), jnp.float32, -bound1, bound1)
    w2 = jax.random.uniform(k3, (hidden_dim, action_dim), jnp.float32, -bound2, bound2)
    b2 = jax.random.uniform(k4, (action_dim,), jnp.float32, -bound2, bound2)
    return w1, b1, w2, b2


if __name__ == "__main__":
    # CartPole-v0: state_dim=4, action_dim=2, hidden_dim=128 (per the module).
    # Batch kept a multiple of 8 (sublane granularity).
    state_dim, hidden_dim, action_dim = 4, 128, 2
    batch = 8

    key = jax.random.PRNGKey(0)
    k_x, k_p = jax.random.split(key)
    x = jax.random.normal(k_x, (batch, state_dim), jnp.float32)
    w1, b1, w2, b2 = init_params(k_p, state_dim, hidden_dim, action_dim)

    out = net_forward(x, w1, b1, w2, b2)
    out = jax.block_until_ready(out)

    # Reference check in plain JAX.
    ref = jnp.maximum(x @ w1 + b1, 0.0) @ w2 + b2
    assert out.shape == (batch, action_dim)
    assert jnp.allclose(out, ref, atol=1e-5, rtol=1e-5), "mismatch vs reference"

    print("KERNEL_OK")
</pallas_src>

<mosaic_0001>
module attributes {stable_mosaic.version = 11 : i64} {
  func.func @_net_kernel(%arg0: memref<8x4xf32, #tpu.memory_space<vmem>>, %arg1: memref<4x128xf32, #tpu.memory_space<vmem>>, %arg2: memref<1x128xf32, #tpu.memory_space<vmem>>, %arg3: memref<128x128xf32, #tpu.memory_space<vmem>>, %arg4: memref<1x128xf32, #tpu.memory_space<vmem>>, %arg5: memref<8x128xf32, #tpu.memory_space<vmem>>) attributes {dimension_semantics = [], scalar_prefetch = 0 : i64, scratch_operands = 0 : i64, tpu.core_type = #tpu.core_type<tc>} {
    %c0 = arith.constant 0 : index
    %c0_0 = arith.constant 0 : index
    %0 = vector.load %arg0[%c0, %c0_0] : memref<8x4xf32, #tpu.memory_space<vmem>>, vector<8x4xf32>
    %c0_1 = arith.constant 0 : index
    %c0_2 = arith.constant 0 : index
    %1 = vector.load %arg1[%c0_1, %c0_2] : memref<4x128xf32, #tpu.memory_space<vmem>>, vector<4x128xf32>
    %2 = vector.extract_strided_slice %0 {offsets = [0, 0], sizes = [8, 1], strides = [1, 1]} : vector<8x4xf32> to vector<8x1xf32>
    %3 = vector.extract_strided_slice %1 {offsets = [0, 0], sizes = [1, 128], strides = [1, 1]} : vector<4x128xf32> to vector<1x128xf32>
    %4 = vector.broadcast %2 : vector<8x1xf32> to vector<8x128xf32>
    %5 = vector.broadcast %3 : vector<1x128xf32> to vector<8x128xf32>
    %6 = arith.mulf %4, %5 : vector<8x128xf32>
    %7 = vector.extract_strided_slice %0 {offsets = [0, 1], sizes = [8, 1], strides = [1, 1]} : vector<8x4xf32> to vector<8x1xf32>
    %8 = vector.extract_strided_slice %1 {offsets = [1, 0], sizes = [1, 128], strides = [1, 1]} : vector<4x128xf32> to vector<1x128xf32>
    %9 = vector.broadcast %7 : vector<8x1xf32> to vector<8x128xf32>
    %10 = vector.broadcast %8 : vector<1x128xf32> to vector<8x128xf32>
    %11 = arith.mulf %9, %10 : vector<8x128xf32>
    %12 = arith.addf %6, %11 : vector<8x128xf32>
    %13 = vector.extract_strided_slice %0 {offsets = [0, 2], sizes = [8, 1], strides = [1, 1]} : vector<8x4xf32> to vector<8x1xf32>
    %14 = vector.extract_strided_slice %1 {offsets = [2, 0], sizes = [1, 128], strides = [1, 1]} : vector<4x128xf32> to vector<1x128xf32>
    %15 = vector.broadcast %13 : vector<8x1xf32> to vector<8x128xf32>
    %16 = vector.broadcast %14 : vector<1x128xf32> to vector<8x128xf32>
    %17 = arith.mulf %15, %16 : vector<8x128xf32>
    %18 = arith.addf %12, %17 : vector<8x128xf32>
    %19 = vector.extract_strided_slice %0 {offsets = [0, 3], sizes = [8, 1], strides = [1, 1]} : vector<8x4xf32> to vector<8x1xf32>
    %20 = vector.extract_strided_slice %1 {offsets = [3, 0], sizes = [1, 128], strides = [1, 1]} : vector<4x128xf32> to vector<1x128xf32>
    %21 = vector.broadcast %19 : vector<8x1xf32> to vector<8x128xf32>
    %22 = vector.broadcast %20 : vector<1x128xf32> to vector<8x128xf32>
    %23 = arith.mulf %21, %22 : vector<8x128xf32>
    %24 = arith.addf %18, %23 : vector<8x128xf32>
    %c0_3 = arith.constant 0 : index
    %c0_4 = arith.constant 0 : index
    %25 = vector.load %arg2[%c0_3, %c0_4] : memref<1x128xf32, #tpu.memory_space<vmem>>, vector<1x128xf32>
    %26 = vector.broadcast %25 : vector<1x128xf32> to vector<8x128xf32>
    %27 = arith.addf %24, %26 : vector<8x128xf32>
    %cst = arith.constant 0.000000e+00 : f32
    %28 = vector.broadcast %cst : f32 to vector<8x128xf32>
    %29 = arith.maximumf %27, %28 : vector<8x128xf32>
    %c0_5 = arith.constant 0 : index
    %c0_6 = arith.constant 0 : index
    %30 = vector.load %arg3[%c0_5, %c0_6] : memref<128x128xf32, #tpu.memory_space<vmem>>, vector<128x128xf32>
    %cst_7 = arith.constant dense<0.000000e+00> : vector<8x128xf32>
    %31 = tpu.matmul %29, %30, %cst_7 {dimension_numbers = #tpu.dot_dimension_numbers<[1], [0], [0], [1], [0, 0, 1, 1], [], []>} : vector<8x128xf32>, vector<128x128xf32>, vector<8x128xf32> -> vector<8x128xf32>
    %c0_8 = arith.constant 0 : index
    %c0_9 = arith.constant 0 : index
    %32 = vector.load %arg4[%c0_8, %c0_9] : memref<1x128xf32, #tpu.memory_space<vmem>>, vector<1x128xf32>
    %33 = vector.broadcast %32 : vector<1x128xf32> to vector<8x128xf32>
    %34 = arith.addf %31, %33 : vector<8x128xf32>
    %c0_10 = arith.constant 0 : index
    %c0_11 = arith.constant 0 : index
    %35 = vector.load %arg5[%c0_10, %c0_11] : memref<8x128xf32, #tpu.memory_space<vmem>>, vector<8x128xf32>
    tpu.vector_store %arg5[%c0_10, %c0_11], %34 {strides = array<i32>} : memref<8x128xf32, #tpu.memory_space<vmem>>, vector<8x128xf32>,
    return
  }
}

</mosaic_0001>

<bundles_post_ra>
// kernel: tpu_custom_call.1
= control target key start
LH: loop header
LB: loop body
LE: loop exit
PB: predicated region body
PF: predicated region fallthrough
CT: control target
= control target key end

     0   :  { %10 = vsyncpa [#allocation3], 0  ;;  %s414_s0 = inlined_call_operand.vmem [shape: f32[8,4], index: 0, kind: input, shape index: {}]   ;;  %s415_s1 = inlined_call_operand.vmem [shape: f32[4,128], index: 1, kind: input, shape index: {}]   ;;  %s416_s2 = inlined_call_operand.vmem [shape: f32[1,128], index: 2, kind: input, shape index: {}]   ;;  %s417_s3 = inlined_call_operand.hbm [shape: f32[128,128], index: 3, kind: input, shape index: {}]   ;;  %s418_s4 = inlined_call_operand.vmem [shape: f32[1,128], index: 4, kind: input, shape index: {}]   ;;  %s419_s5 = inlined_call_operand.hbm [shape: f32[8,128], index: 5, kind: output, shape index: {}]  }
   0x1   :  { %11 = vsyncpa [#allocation4], 0  ;;  %s337_s18 = smov [#allocation2]   ;;  %s289_s22 = scalar_lea.hbm %s417_s3, 2048 }
   0x2   :  { %s23_s19 = sshll.u32 %s337_s18, 4  ;;  %p290_p0 = scmp.ne.s32.totalorder %s417_s3, %s289_s22  ;;  %s24_s19 = int_to_ptr.vmem [resolvable:$true] %s23_s19 }
   0x3   :  { %p293_p1 = scmp.lt.u32.totalorder %s289_s22, %s417_s3 }
   0x5   :  { %p295_p2 = pnand %p293_p1, %p290_p0 }
   0x7   :  { %298 = shalt.err (!%p295_p2)
}
   0x8   :  { %s299_s27 = scalar_lea.vmem %s24_s19, 2048  ;;  %p304_p4 = scmp.lt.s32.totalorder %s24_s19, %s24_s19 }
   0x9   :  { %p300_p3 = scmp.ne.s32.totalorder %s24_s19, %s299_s27  ;;  %p305_p5 = scmp.lt.s32.totalorder %s299_s27, %s299_s27 }
   0xb   :  { %p306_p6 = por %p305_p5, %p304_p4 }
   0xd   :  { %p307_p7 = pnand %p306_p6, %p300_p3 }
   0xf   :  { %310 = shalt.err (!%p307_p7)
}
  0x10   :  { %s338_s28 = smov 128   ;;  %s339_s29 = smov 8  }
  0x11   :  { %29 = dma.hbm_to_vmem [thread:$0]  %s417_s3, 2048, %s24_s19, [#allocation3], %s338_s28, %s338_s28, %s339_s29  }
  0x12   :  { %333 = dma.done.wait [#allocation3], 2048  }
  0x13   :  { %334 = vsyncadd [#allocation3], 4294965248  ;;  %v340_v0 = vmov 0   ;;  %v341_v1 = vmov 2   ;;  %v342_v2 = vmov 0.0|0.0   ;;  %v35_v3 = vld [vmem:[%s414_s0] sm:$0xff]  ;;  %v42_v31 = vlaneseq }
  0x14   :  { %284 = vset.pattern.permute.xlu0 %v340_v0  ;;  %286 = vset.pattern.permute.xlu1 %v341_v1  ;;  %v86_v4 = vld [vmem:[#allocation2] sm:$0xff]  ;;  %v87_v5 = vld [vmem:[#allocation2 + $0x8] sm:$0xff]  ;;  %v88_v7 = vld [vmem:[#allocation2 + $0x10] sm:$0xff]  ;;  %v343_v12 = vmov 1   ;;  %v344_v13 = vmov 3   ;;  %vm345_vm0 = vmmov 0  }
  0x15   :  { %249 = vmatprep.subr.bf16.mxu0 %v342_v2  ;;  %39 = vperm.xlu0 %284, %v35_v3   ;;  %v250_v6 = vpack.c.bf16 %v87_v5, %v86_v4  ;;  %v89_v8 = vld [vmem:[#allocation2 + $0x18] sm:$0xff]  ;;  %v90_v10 = vld [vmem:[#allocation2 + $0x20] sm:$0xff]  ;;  %v91_v11 = vld [vmem:[#allocation2 + $0x28] sm:$0xff]  ;;  %v346_v20 = vmov 0.0   ;;  %v43_v32 = vshrl.u32 %v42_v31, 7  ;;  %s347_s12 = smov [#allocation5]  }
  0x16   :  { %58 = vperm.xlu1 %286, %v35_v3   ;;  %v253_v9 = vpack.c.bf16 %v89_v8, %v88_v7  ;;  %v256_v14 = vpack.c.bf16 %v91_v11, %v90_v10  ;;  %v92_v15 = vld [vmem:[#allocation2 + $0x30] sm:$0xff]  ;;  %v93_v16 = vld [vmem:[#allocation2 + $0x38] sm:$0xff]  ;;  %v94_v18 = vld [vmem:[#allocation2 + $0x40] sm:$0xff]  ;;  %246 = vmatprep.mubr.msk.f32.mxu0 %vm345_vm0, %v346_v20  ;;  %s186_s13 = sshll.u32 %s347_s12, 4  ;;  %s187_s13 = int_to_ptr.vmem [resolvable:$true] %s186_s13 }
  0x17   :  { %251 = vmatpush3.bf16.msra.mxu0 %v250_v6  ;;  %v259_v17 = vpack.c.bf16 %v93_v16, %v92_v15  ;;  %v95_v19 = vld [vmem:[#allocation2 + $0x48] sm:$0xff]  ;;  %v96_v22 = vld [vmem:[#allocation2 + $0x50] sm:$0xff]  ;;  %v97_v23 = vld [vmem:[#allocation2 + $0x58] sm:$0xff]  ;;  %v44_v33 = vsub.s32 0, %v43_v32  ;;  %v53_v34 = vsub.s32 1, %v43_v32  ;;  %v63_v37 = vsub.s32 2, %v43_v32  ;;  %p316_p9 = scmp.lt.s32.totalorder %s187_s13, %s187_s13 }
  0x18   :  { %252 = vmatprep.subr.bf16.mxu0 %v342_v2  ;;  %v262_v21 = vpack.c.bf16 %v95_v19, %v94_v18  ;;  %v265_v24 = vpack.c.bf16 %v97_v23, %v96_v22  ;;  %v98_v25 = vld [vmem:[#allocation2 + $0x60] sm:$0xff]  ;;  %v99_v26 = vld [vmem:[#allocation2 + $0x68] sm:$0xff]  ;;  %v100_v28 = vld [vmem:[#allocation2 + $0x70] sm:$0xff]  ;;  %v73_v39 = vsub.s32 3, %v43_v32  ;;  %s311_s14 = scalar_lea.vmem %s187_s13, 128 }
  0x19   :  { %285 = vset.pattern.permute.xlu0 %v343_v12  ;;  %v268_v27 = vpack.c.bf16 %v99_v26, %v98_v25  ;;  %v101_v29 = vld [vmem:[#allocation2 + $0x78] sm:$0xff]  ;;  %v36_v35 = vld [vmem:[%s415_s1] sm:$0xf]  ;;  %p312_p8 = scmp.ne.s32.totalorder %s187_s13, %s311_s14  ;;  %p317_p10 = scmp.lt.s32.totalorder %s311_s14, %s311_s14 }
  0x1a   :  { %287 = vset.pattern.permute.xlu1 %v344_v13  ;;  %48 = vperm.xlu0 %285, %v35_v3   ;;  %v271_v30 = vpack.c.bf16 %v101_v29, %v100_v28  ;;  %v45_v40 = vrot.slane %v36_v35, %v44_v33  ;;  %v54_v41 = vrot.slane %v36_v35, %v53_v34  ;;  %v195_v52 = vld [vmem:[%s416_s2] ss:$0 sm:$0xff] }
  0x1b   :  { %68 = vperm.xlu1 %287, %v35_v3   ;;  %254 = vmatpush3.bf16.msra.mxu0 %v253_v9  ;;  %v64_v42 = vrot.slane %v36_v35, %v63_v37  ;;  %v74_v43 = vrot.slane %v36_v35, %v73_v39  ;;  %v196_v56 = vld [vmem:[%s418_s4] ss:$0 sm:$0xff]  ;;  %p318_p11 = por %p317_p10, %p316_p9 }
  0x1c   :  { %255 = vmatprep.subr.bf16.mxu0 %v342_v2 }
  0x1d   :  { %p319_p12 = pnand %p318_p11, %p312_p8 }
  0x1e   :  { %288 = vset.pattern.permute.xlu0 %v344_v13 }
  0x1f   :  { %257 = vmatpush3.bf16.msra.mxu0 %v256_v14 }
  0x20   :  { %258 = vmatprep.subr.bf16.mxu0 %v342_v2 }
  0x23   :  { %260 = vmatpush3.bf16.msra.mxu0 %v259_v17 }
  0x24   :  { %261 = vmatprep.subr.bf16.mxu0 %v342_v2 }
  0x27   :  { %263 = vmatpush3.bf16.msra.mxu0 %v262_v21 }
  0x28   :  { %264 = vmatprep.subr.bf16.mxu0 %v342_v2 }
  0x2b   :  { %266 = vmatpush3.bf16.msra.mxu0 %v265_v24 }
  0x2c   :  { %267 = vmatprep.subr.bf16.mxu0 %v342_v2 }
  0x2f   :  { %269 = vmatpush3.bf16.msra.mxu0 %v268_v27 }
  0x30   :  { %270 = vmatprep.subr.bf16.mxu0 %v342_v2 }
  0x33   :  { %272 = vmatpush3.bf16.msra.mxu0 %v271_v30 }
  0x94   :  { %v40_v36 = vpop.permute.xlu0 %39 }
  0x95   :  { %v59_v38 = vpop.permute.xlu1 %58  ;;  %v46_v46 = vmul.f32 %v45_v40, %v40_v36 }
  0x96   :  { %v65_v48 = vmul.f32 %v64_v42, %v59_v38 }
  0x99   :  { %v49_v44 = vpop.permute.xlu0 %48 }
  0x9a   :  { %v69_v45 = vpop.permute.xlu1 %68  ;;  %v55_v47 = vmul.f32 %v54_v41, %v49_v44 }
  0x9b   :  { %v75_v50 = vmul.f32 %v74_v43, %v69_v45 }
  0x9c   :  { %v56_v49 = vadd.f32 %v55_v47, %v46_v46 }
  0x9e   :  { %v66_v51 = vadd.f32 %v65_v48, %v56_v49 }
  0xa0   :  { %v76_v53 = vadd.f32 %v75_v50, %v66_v51 }
  0xa2   :  { %v84_v54 = vadd.f32 %v195_v52, %v76_v53 }
  0xa4   :  { %v85_v55 = vmax.f32 %v84_v54, 0.0 }
  0xa6   :  { %247 = vmatmul.mubr.f32.vlgmr.msra.gmra.mrb[0].mxu0 %v85_v55 }
 0x179   :  { %v175_v57 = vpop.f32.mrb[0].mxu0 }
 0x17a   :  { %v176_v58 = vadd.f32 %v196_v56, %v175_v57  ;;  %v248_v59 = vpop.f32.mrb[1].mxu0 }
 0x17c   :  { %179 = vst [vmem:[#allocation5] sm:$0xff] %v176_v58 }
 0x17d   :  { %322 = shalt.err (!%p319_p12)
}
 0x17e   :  { %s323_s16 = scalar_lea.hbm %s419_s5, 128 }
 0x17f   :  { %p324_p13 = scmp.ne.s32.totalorder %s419_s5, %s323_s16  ;;  %p327_p0 = scmp.lt.u32.totalorder %s323_s16, %s419_s5 }
 0x181   :  { %p329_p1 = pnand %p327_p0, %p324_p13 }
 0x183   :  { %332 = shalt.err (!%p329_p1)
}
 0x184   :  { %189 = dma.vmem_to_hbm [thread:$0]  %s187_s13, 128, %s419_s5, [#allocation4]  }
 0x185   :  { %335 = dma.done.wait [#allocation4], 128  }
 0x186   :  { %336 = vsyncadd [#allocation4], 4294967168 }
 0x187   :  { %193 = vsyncpa [#allocation3], 1 }
 0x188   :  { %194 = vsyncpa [#allocation4], 1 }

</bundles_post_ra>
